<compile_context>
chip_gen: v6e
topology: v6e:2x2x1
jax: 0.10.0
libtpu: 0.0.40
codegen_flags: <defaults>
</compile_context>

<pallas_src>
import jax
import jax.numpy as jnp
from jax.experimental import pallas as pl
from jax.experimental.pallas import tpu as pltpu

HIDDEN = 128


def _round_up(n, m):
    return ((n + m - 1) // m) * m


def residual_mlp_kernel(x_ref, w_in_ref, b_in_ref, w1_ref, b1_ref,
                        w2_ref, b2_ref, w_out_ref, b_out_ref, o_ref):
    # x arrives f32; cast to bf16 for the MXU (f32 accumulation everywhere).
    x = x_ref[...].astype(jnp.bfloat16)
    h = jnp.dot(x, w_in_ref[...], preferred_element_type=jnp.float32)
    h = jnp.maximum(h + b_in_ref[...], 0.0)

    # layer1 + ReLU + residual (element-wise chain stays f32).
    residual = h
    h1 = jnp.dot(h.astype(jnp.bfloat16), w1_ref[...],
                 preferred_element_type=jnp.float32)
    h = jnp.maximum(h1 + b1_ref[...], 0.0) + residual

    # layer2 + ReLU + residual
    residual = h
    h2 = jnp.dot(h.astype(jnp.bfloat16), w2_ref[...],
                 preferred_element_type=jnp.float32)
    h = jnp.maximum(h2 + b2_ref[...], 0.0) + residual

    # output layer (no activation); narrow (output_size-wide) store.
    out = jnp.dot(h.astype(jnp.bfloat16), w_out_ref[...],
                  preferred_element_type=jnp.float32)
    o_ref[...] = (out + b_out_ref[...]).astype(o_ref.dtype)


def prepare_params(params):
    """One-time param prep: cast matmul weights to bf16, keep biases f32.

    Call once and reuse across forward calls so no cast/pad ops re-execute
    per step under jit.
    """
    return dict(
        w_in=params["w_in"].astype(jnp.bfloat16),
        w1=params["w1"].astype(jnp.bfloat16),
        w2=params["w2"].astype(jnp.bfloat16),
        w_out=params["w_out"].astype(jnp.bfloat16),
        b_in=params["b_in"].astype(jnp.float32),
        b1=params["b1"].astype(jnp.float32),
        b2=params["b2"].astype(jnp.float32),
        b_out=params["b_out"].astype(jnp.float32),
    )


def residual_model_forward(x, prepared, *, tile_b=1024):
    """x: [B, input_size] float32. prepared: output of prepare_params()."""
    B, input_size = x.shape
    output_size = prepared["w_out"].shape[1]

    # ---- batch tiling: multiple of 16 (bf16 sublane packing), >= 2 grid
    # steps when the batch is large enough (keeps both v7x TCs busy). -------
    b16 = _round_up(max(B, 1), 16)
    tb = min(max(16, (tile_b // 16) * 16), b16)
    if tb >= b16 and b16 >= 32:
        tb = _round_up((b16 + 1) // 2, 16)      # split into (at least) 2 tiles
    b_pad = _round_up(B, tb)
    grid = (b_pad // tb,)

    # Only the batch axis ever needs padding now (feature dims are real).
    x_p = x if b_pad == B else jnp.zeros((b_pad, input_size), x.dtype).at[:B].set(x)

    def full(shape):
        # Whole-array block, resident across the batch grid axis.
        return pl.BlockSpec(shape, lambda i: (0,) * len(shape))

    # Cost estimate from real feature shapes (b_pad batch rows are what the
    # kernel actually processes).
    flops = 2 * b_pad * (input_size * HIDDEN
                         + 2 * HIDDEN * HIDDEN
                         + HIDDEN * output_size)
    bytes_accessed = (
        b_pad * input_size * 4                                   # x (f32)
        + (prepared["w_in"].size + prepared["w1"].size
           + prepared["w2"].size + prepared["w_out"].size) * 2   # bf16 weights
        + (prepared["b_in"].size + prepared["b1"].size
           + prepared["b2"].size + prepared["b_out"].size) * 4   # f32 biases
        + b_pad * output_size * 4)                               # output (f32)

    out_padded = pl.pallas_call(
        residual_mlp_kernel,
        out_shape=jax.ShapeDtypeStruct((b_pad, output_size), jnp.float32),
        grid_spec=pltpu.PrefetchScalarGridSpec(
            num_scalar_prefetch=0,
            grid=grid,
            in_specs=[
                pl.BlockSpec((tb, input_size), lambda i: (i, 0)),  # x (f32)
                full((input_size, HIDDEN)),                        # w_in
                full((1, HIDDEN)),                                 # b_in
                full((HIDDEN, HIDDEN)),                            # w1
                full((1, HIDDEN)),                                 # b1
                full((HIDDEN, HIDDEN)),                            # w2
                full((1, HIDDEN)),                                 # b2
                full((HIDDEN, output_size)),                       # w_out
                full((1, output_size)),                            # b_out
            ],
            out_specs=pl.BlockSpec((tb, output_size), lambda i: (i, 0)),
        ),
        compiler_params=pltpu.CompilerParams(
            dimension_semantics=("parallel",)),
        cost_estimate=pl.CostEstimate(
            flops=flops, transcendentals=0, bytes_accessed=bytes_accessed),
    )(x_p, prepared["w_in"], prepared["b_in"], prepared["w1"], prepared["b1"],
      prepared["w2"], prepared["b2"], prepared["w_out"], prepared["b_out"])

    # Strip batch padding (features are already the real width).
    return out_padded if b_pad == B else out_padded[:B]


def init_params(key, input_size, output_size):
    """Deterministic synthetic params (PyTorch-style fan_in uniform), f32."""
    def linear(key, fan_in, fan_out):
        k1, k2 = jax.random.split(key)
        bound = 1.0 / jnp.sqrt(fan_in)
        w = jax.random.uniform(k1, (fan_in, fan_out), jnp.float32, -bound, bound)
        b = jax.random.uniform(k2, (1, fan_out), jnp.float32, -bound, bound)
        return w, b

    k_in, k1, k2, k_out = jax.random.split(key, 4)
    w_in, b_in = linear(k_in, input_size, HIDDEN)
    w1, b1 = linear(k1, HIDDEN, HIDDEN)
    w2, b2 = linear(k2, HIDDEN, HIDDEN)
    w_out, b_out = linear(k_out, HIDDEN, output_size)
    return dict(w_in=w_in, b_in=b_in, w1=w1, b1=b1,
                w2=w2, b2=b2, w_out=w_out, b_out=b_out)


def reference_forward(x, p):
    relu = lambda v: jnp.maximum(v, 0.0)
    h = relu(x @ p["w_in"] + p["b_in"])
    res = h
    h = relu(h @ p["w1"] + p["b1"]) + res
    res = h
    h = relu(h @ p["w2"] + p["b2"]) + res
    return h @ p["w_out"] + p["b_out"]


if __name__ == "__main__":
    # Small demo shapes; batch is deliberately not a multiple of 16 to
    # exercise batch padding, and the >=2-grid-step logic gives grid=(2,).
    batch, input_size, output_size = 40, 32, 10

    key = jax.random.PRNGKey(0)
    kx, kp = jax.random.split(key)
    x = jax.random.normal(kx, (batch, input_size), dtype=jnp.float32)
    params = init_params(kp, input_size, output_size)

    prepared = prepare_params(params)           # one-time weight cast (bf16)
    fwd = jax.jit(lambda xv: residual_model_forward(xv, prepared))

    out = jax.block_until_ready(fwd(x))

    ref = reference_forward(x, params)
    assert out.shape == (batch, output_size)
    # bf16 matmul inputs with f32 accumulate -> looser tolerance than pure f32.
    assert jnp.allclose(out, ref, atol=5e-2, rtol=5e-2)

    print("KERNEL_OK")
</pallas_src>

<mosaic_0001>
module attributes {stable_mosaic.version = 11 : i64} {
  func.func @residual_mlp_kernel(%arg0: i32, %arg1: memref<32x32xf32, #tpu.memory_space<vmem>>, %arg2: memref<32x128xbf16, #tpu.memory_space<vmem>>, %arg3: memref<1x128xf32, #tpu.memory_space<vmem>>, %arg4: memref<128x128xbf16, #tpu.memory_space<vmem>>, %arg5: memref<1x128xf32, #tpu.memory_space<vmem>>, %arg6: memref<128x128xbf16, #tpu.memory_space<vmem>>, %arg7: memref<1x128xf32, #tpu.memory_space<vmem>>, %arg8: memref<128x10xbf16, #tpu.memory_space<vmem>>, %arg9: memref<1x10xf32, #tpu.memory_space<vmem>>, %arg10: memref<32x10xf32, #tpu.memory_space<vmem>>) attributes {dimension_semantics = [#tpu.dimension_semantics<parallel>], iteration_bounds = array<i64: 2>, scalar_prefetch = 0 : i64, scratch_operands = 0 : i64, tpu.core_type = #tpu.core_type<tc>, window_params = [{transform_indices = @transform_0, window_bounds = array<i64: 32, 32>}, {pipeline_mode = #tpu.pipeline_mode<synchronous>, transform_indices = @transform_1, window_bounds = array<i64: 32, 128>}, {pipeline_mode = #tpu.pipeline_mode<synchronous>, transform_indices = @transform_2, window_bounds = array<i64: 1, 128>}, {pipeline_mode = #tpu.pipeline_mode<synchronous>, transform_indices = @transform_3, window_bounds = array<i64: 128, 128>}, {pipeline_mode = #tpu.pipeline_mode<synchronous>, transform_indices = @transform_4, window_bounds = array<i64: 1, 128>}, {pipeline_mode = #tpu.pipeline_mode<synchronous>, transform_indices = @transform_5, window_bounds = array<i64: 128, 128>}, {pipeline_mode = #tpu.pipeline_mode<synchronous>, transform_indices = @transform_6, window_bounds = array<i64: 1, 128>}, {pipeline_mode = #tpu.pipeline_mode<synchronous>, transform_indices = @transform_7, window_bounds = array<i64: 128, 10>}, {pipeline_mode = #tpu.pipeline_mode<synchronous>, transform_indices = @transform_8, window_bounds = array<i64: 1, 10>}, {transform_indices = @transform_9, window_bounds = array<i64: 32, 10>}]} {
    %c0 = arith.constant 0 : index
    %c0_0 = arith.constant 0 : index
    %0 = vector.load %arg1[%c0, %c0_0] : memref<32x32xf32, #tpu.memory_space<vmem>>, vector<32x32xf32>
    %1 = arith.truncf %0 : vector<32x32xf32> to vector<32x32xbf16>
    %c0_1 = arith.constant 0 : index
    %c0_2 = arith.constant 0 : index
    %2 = vector.load %arg2[%c0_1, %c0_2] : memref<32x128xbf16, #tpu.memory_space<vmem>>, vector<32x128xbf16>
    %cst = arith.constant dense<0.000000e+00> : vector<32x128xf32>
    %3 = tpu.matmul %1, %2, %cst {dimension_numbers = #tpu.dot_dimension_numbers<[1], [0], [0], [1], [0, 0, 1, 1], [], []>} : vector<32x32xbf16>, vector<32x128xbf16>, vector<32x128xf32> -> vector<32x128xf32>
    %c0_3 = arith.constant 0 : index
    %c0_4 = arith.constant 0 : index
    %4 = vector.load %arg3[%c0_3, %c0_4] : memref<1x128xf32, #tpu.memory_space<vmem>>, vector<1x128xf32>
    %5 = vector.broadcast %4 : vector<1x128xf32> to vector<32x128xf32>
    %6 = arith.addf %3, %5 : vector<32x128xf32>
    %cst_5 = arith.constant 0.000000e+00 : f32
    %7 = vector.broadcast %cst_5 : f32 to vector<32x128xf32>
    %8 = arith.maximumf %6, %7 : vector<32x128xf32>
    %9 = arith.truncf %8 : vector<32x128xf32> to vector<32x128xbf16>
    %c0_6 = arith.constant 0 : index
    %c0_7 = arith.constant 0 : index
    %10 = vector.load %arg4[%c0_6, %c0_7] : memref<128x128xbf16, #tpu.memory_space<vmem>>, vector<128x128xbf16>
    %cst_8 = arith.constant dense<0.000000e+00> : vector<32x128xf32>
    %11 = tpu.matmul %9, %10, %cst_8 {dimension_numbers = #tpu.dot_dimension_numbers<[1], [0], [0], [1], [0, 0, 1, 1], [], []>} : vector<32x128xbf16>, vector<128x128xbf16>, vector<32x128xf32> -> vector<32x128xf32>
    %c0_9 = arith.constant 0 : index
    %c0_10 = arith.constant 0 : index
    %12 = vector.load %arg5[%c0_9, %c0_10] : memref<1x128xf32, #tpu.memory_space<vmem>>, vector<1x128xf32>
    %13 = vector.broadcast %12 : vector<1x128xf32> to vector<32x128xf32>
    %14 = arith.addf %11, %13 : vector<32x128xf32>
    %cst_11 = arith.constant 0.000000e+00 : f32
    %15 = vector.broadcast %cst_11 : f32 to vector<32x128xf32>
    %16 = arith.maximumf %14, %15 : vector<32x128xf32>
    %17 = arith.addf %16, %8 : vector<32x128xf32>
    %18 = arith.truncf %17 : vector<32x128xf32> to vector<32x128xbf16>
    %c0_12 = arith.constant 0 : index
    %c0_13 = arith.constant 0 : index
    %19 = vector.load %arg6[%c0_12, %c0_13] : memref<128x128xbf16, #tpu.memory_space<vmem>>, vector<128x128xbf16>
    %cst_14 = arith.constant dense<0.000000e+00> : vector<32x128xf32>
    %20 = tpu.matmul %18, %19, %cst_14 {dimension_numbers = #tpu.dot_dimension_numbers<[1], [0], [0], [1], [0, 0, 1, 1], [], []>} : vector<32x128xbf16>, vector<128x128xbf16>, vector<32x128xf32> -> vector<32x128xf32>
    %c0_15 = arith.constant 0 : index
    %c0_16 = arith.constant 0 : index
    %21 = vector.load %arg7[%c0_15, %c0_16] : memref<1x128xf32, #tpu.memory_space<vmem>>, vector<1x128xf32>
    %22 = vector.broadcast %21 : vector<1x128xf32> to vector<32x128xf32>
    %23 = arith.addf %20, %22 : vector<32x128xf32>
    %cst_17 = arith.constant 0.000000e+00 : f32
    %24 = vector.broadcast %cst_17 : f32 to vector<32x128xf32>
    %25 = arith.maximumf %23, %24 : vector<32x128xf32>
    %26 = arith.addf %25, %17 : vector<32x128xf32>
    %27 = arith.truncf %26 : vector<32x128xf32> to vector<32x128xbf16>
    %c0_18 = arith.constant 0 : index
    %c0_19 = arith.constant 0 : index
    %28 = vector.load %arg8[%c0_18, %c0_19] : memref<128x10xbf16, #tpu.memory_space<vmem>>, vector<128x10xbf16>
    %cst_20 = arith.constant dense<0.000000e+00> : vector<32x10xf32>
    %29 = tpu.matmul %27, %28, %cst_20 {dimension_numbers = #tpu.dot_dimension_numbers<[1], [0], [0], [1], [0, 0, 1, 1], [], []>} : vector<32x128xbf16>, vector<128x10xbf16>, vector<32x10xf32> -> vector<32x10xf32>
    %c0_21 = arith.constant 0 : index
    %c0_22 = arith.constant 0 : index
    %30 = vector.load %arg9[%c0_21, %c0_22] : memref<1x10xf32, #tpu.memory_space<vmem>>, vector<1x10xf32>
    %31 = vector.broadcast %30 : vector<1x10xf32> to vector<32x10xf32>
    %32 = arith.addf %29, %31 : vector<32x10xf32>
    %c0_23 = arith.constant 0 : index
    %c0_24 = arith.constant 0 : index
    %33 = vector.load %arg10[%c0_23, %c0_24] : memref<32x10xf32, #tpu.memory_space<vmem>>, vector<32x10xf32>
    tpu.vector_store %arg10[%c0_23, %c0_24], %32 {strides = array<i32>} : memref<32x10xf32, #tpu.memory_space<vmem>>, vector<32x10xf32>,
    return
  }
  func.func @transform_0(%arg0: i32) -> (i32, i32) {
    %c0_i32 = arith.constant 0 : i32
    %c0_i32_0 = arith.constant 0 : i32
    return %arg0, %c0_i32 : i32, i32
  }
  func.func @transform_1(%arg0: i32) -> (i32, i32) {
    %c0_i32 = arith.constant 0 : i32
    %c0_i32_0 = arith.constant 0 : i32
    %c0_i32_1 = arith.constant 0 : i32
    return %c0_i32, %c0_i32_0 : i32, i32
  }
  func.func @transform_2(%arg0: i32) -> (i32, i32) {
    %c0_i32 = arith.constant 0 : i32
    %c0_i32_0 = arith.constant 0 : i32
    %c0_i32_1 = arith.constant 0 : i32
    return %c0_i32, %c0_i32_0 : i32, i32
  }
  func.func @transform_3(%arg0: i32) -> (i32, i32) {
    %c0_i32 = arith.constant 0 : i32
    %c0_i32_0 = arith.constant 0 : i32
    %c0_i32_1 = arith.constant 0 : i32
    return %c0_i32, %c0_i32_0 : i32, i32
  }
  func.func @transform_4(%arg0: i32) -> (i32, i32) {
    %c0_i32 = arith.constant 0 : i32
    %c0_i32_0 = arith.constant 0 : i32
    %c0_i32_1 = arith.constant 0 : i32
    return %c0_i32, %c0_i32_0 : i32, i32
  }
  func.func @transform_5(%arg0: i32) -> (i32, i32) {
    %c0_i32 = arith.constant 0 : i32
    %c0_i32_0 = arith.constant 0 : i32
    %c0_i32_1 = arith.constant 0 : i32
    return %c0_i32, %c0_i32_0 : i32, i32
  }
  func.func @transform_6(%arg0: i32) -> (i32, i32) {
    %c0_i32 = arith.constant 0 : i32
    %c0_i32_0 = arith.constant 0 : i32
    %c0_i32_1 = arith.constant 0 : i32
    return %c0_i32, %c0_i32_0 : i32, i32
  }
  func.func @transform_7(%arg0: i32) -> (i32, i32) {
    %c0_i32 = arith.constant 0 : i32
    %c0_i32_0 = arith.constant 0 : i32
    %c0_i32_1 = arith.constant 0 : i32
    return %c0_i32, %c0_i32_0 : i32, i32
  }
  func.func @transform_8(%arg0: i32) -> (i32, i32) {
    %c0_i32 = arith.constant 0 : i32
    %c0_i32_0 = arith.constant 0 : i32
    %c0_i32_1 = arith.constant 0 : i32
    return %c0_i32, %c0_i32_0 : i32, i32
  }
  func.func @transform_9(%arg0: i32) -> (i32, i32) {
    %c0_i32 = arith.constant 0 : i32
    %c0_i32_0 = arith.constant 0 : i32
    return %arg0, %c0_i32 : i32, i32
  }
}

</mosaic_0001>

<bundles_post_ra>
// kernel: _lambda_.1
= control target key start
LH: loop header
LB: loop body
LE: loop exit
PB: predicated region body
PF: predicated region fallthrough
CT: control target
= control target key end

     0   :  { %14 = vsyncpa [#allocation3], 0  ;;  %s1181_s30 = smov 0   ;;  %s1292_s0 = inlined_call_operand.vmem [shape: f32[64,32], index: 0, kind: input, shape index: {}]   ;;  %s1293_s1 = inlined_call_operand.vmem [shape: bf16[32,128], index: 1, kind: input, shape index: {}]   ;;  %s1294_s2 = inlined_call_operand.vmem [shape: f32[1,128], index: 2, kind: input, shape index: {}]   ;;  %s1295_s3 = inlined_call_operand.hbm [shape: bf16[128,128], index: 3, kind: input, shape index: {}]   ;;  %s1296_s4 = inlined_call_operand.vmem [shape: f32[1,128], index: 4, kind: input, shape index: {}]   ;;  %s1297_s5 = inlined_call_operand.vmem [shape: bf16[128,128], index: 5, kind: input, shape index: {}]   ;;  %s1298_s6 = inlined_call_operand.vmem [shape: f32[1,128], index: 6, kind: input, shape index: {}]   ;;  %s1299_s7 = inlined_call_operand.vmem [shape: bf16[128,10], index: 7, kind: input, shape index: {}]   ;;  %s1300_s8 = inlined_call_operand.vmem [shape: f32[1,10], index: 8, kind: input, shape index: {}]   ;;  %s1301_s9 = inlined_call_operand.vmem [shape: f32[64,10], index: 9, kind: output, shape index: {}]  }
   0x1 LB: > { %s896_s10 = sadd.s32 4294967295, %s1126_s30   ;;  %p898_p0 = scmp.ge.s32.totalorder %s1126_s30, 1  ;;  %s1126_s30 = sphi %s1181_s30, %s20_s30  }
   0x2   : > { %p245_p1 = scmp.lt.s32.totalorder %s1126_s30, 3  ;;  %s1128_s11 = smov [#allocation2]  }
   0x3   : > { %s263_s12 = sshll.u32 %s1128_s11, 4  ;;  %p1193_p3 = scmp.eq.s32.totalorder %s896_s10, 0  ;;  %s264_s12 = int_to_ptr.vmem [resolvable:$true] %s263_s12 }
   0x4   : > { %p1189_p2 = pnand %p898_p0, %p245_p1  ;;  %s1101_s15 = scalar_lea.vmem %s264_s12, 1024 }
   0x5   : > { %p1102_p7 = scmp.ne.s32.totalorder %s264_s12, %s1101_s15  ;;  %p1109_p10 = scmp.lt.s32.totalorder %s264_s12, %s264_s12 }
   0x6   : > { %p1047_p4 = pneg %p1189_p2  ;;  %p1110_p11 = scmp.lt.s32.totalorder %s1101_s15, %s1101_s15 }
   0x8   : > { %p1048_p5 = pnand %p1193_p3, %p1047_p4  ;;  %p1111_p12 = por %p1110_p11, %p1109_p10 }
   0xa   : > { %p1092_p6 = pneg %p1048_p5 }
   0xc   : > { %p1104_p8 = pnand %p1102_p7, %p1092_p6 }
   0xe   : > { %p1105_p9 = pneg %p1104_p8 }
  0x10   : > { %p1112_p13 = pnand %p1111_p12, %p1105_p9 }
  0x12   : > { %1115 = shalt.err (!%p1112_p13)
}
  0x13   : > { %s1129_s16 = smov 64   ;;  %s1130_s17 = smov 4  }
  0x14   : > { %1050 = dma.hbm_to_vmem [thread:$0]  (!%p1048_p5), %s1295_s3, 1024, %s264_s12, [#allocation3], %s1129_s16, %s1129_s16, %s1130_s17  }
  0x15   : > { %303 = sbr.rel (%p1189_p2) target bundleno = 861 (0x35d), region = 56 }
  0x1a   : > { %1121 = dma.done.wait (%p1193_p3), [#allocation3], 1024  }
  0x1b   : > { %1123 = vsyncadd (%p1193_p3), [#allocation3], 4294966272  ;;  %s903_s20 = sshll.u32 %s896_s10, 2  ;;  %v1064_v0 = vld [vmem:[%s1293_s1 + $0x8] sm:$0xff]   ;;  %v1065_v1 = vld [vmem:[%s1293_s1] sm:$0xff]   ;;  %vm381_vm0 = vcmask 261120  }
  0x1c   : > { %p340_p0 = scmp.lt.s32.totalorder %s903_s20, 7  ;;  %975 = vmatprep.subr.bf16.mxu0 %v1064_v0  ;;  %v1066_v7 = vld [vmem:[#allocation2 + $0x38] sm:$0xff]   ;;  %v1067_v8 = vld [vmem:[#allocation2 + $0x30] sm:$0xff]   ;;  %v1068_v10 = vld [vmem:[#allocation2 + $0x28] sm:$0xff]   ;;  %vm823_vm1 = vcmask 80896  }
  0x1d   : > { %976 = vmatpush3.bf16.msra.mxu0 %v1064_v0  ;;  %983 = vmatprep.subr.bf16.mxu1 %v1066_v7  ;;  %v1069_v11 = vld [vmem:[#allocation2 + $0x20] sm:$0xff]   ;;  %v1070_v12 = vld [vmem:[#allocation2 + $0x18] sm:$0xff]   ;;  %v1071_v13 = vld [vmem:[#allocation2 + $0x10] sm:$0xff]  }
  0x1e   : > { %s1305_s20 = smov (!%p340_p0, %s903_s20), 7  ;;  %977 = vmatprep.subr.bf16.mxu0 %v1065_v1  ;;  %984 = vmatpush3.bf16.msra.mxu1 %v1066_v7  ;;  %v1072_v14 = vld [vmem:[#allocation2 + $0x8] sm:$0xff]   ;;  %v1073_v15 = vld [vmem:[#allocation2] sm:$0xff]   ;;  %v1074_v16 = vld [vmem:[%s1297_s5 + $0x38] sm:$0xff]  }
  0x1f   : > { %s904_s21 = sshll.u32 %s1305_s20, 3  ;;  %985 = vmatprep.subr.bf16.mxu1 %v1067_v8  ;;  %v1075_v17 = vld [vmem:[%s1297_s5 + $0x30] sm:$0xff]   ;;  %v1076_v18 = vld [vmem:[%s1297_s5 + $0x28] sm:$0xff]   ;;  %v1077_v19 = vld [vmem:[%s1297_s5 + $0x20] sm:$0xff]  }
  0x20   : > { %s343_s24 = scalar_lea.vmem %s1292_s0, %s904_s21  ;;  %v907_v22 = vld [vmem:[%s1294_s2] ss:$0 sm:$0xff]  ;;  %v1078_v35 = vld [vmem:[%s1297_s5 + $0x18] sm:$0xff]   ;;  %v1079_v36 = vld [vmem:[%s1297_s5 + $0x10] sm:$0xff]   ;;  %s349_s13 = scalar_lea.vmem %s1301_s9, %s904_s21 }
  0x21   : > { %v352_v2 = vld [vmem:[%s343_s24] sm:$0xff]  ;;  %v353_v3 = vld [vmem:[%s343_s24 + $0x8] sm:$0xff]  ;;  %v354_v4 = vld [vmem:[%s343_s24 + $0x10] sm:$0xff]  ;;  %978 = vmatpush3.bf16.msra.mxu0 %v1065_v1 }
  0x22   : > { %v356_v5 = vpack.c.bf16 %v353_v3, %v352_v2  ;;  %v355_v6 = vld [vmem:[%s343_s24 + $0x18] sm:$0xff]  ;;  %986 = vmatpush3.bf16.msra.mxu1 %v1067_v8  ;;  %1003 = vmatprep.subr.bf16.mxu0 %v1074_v16  ;;  %v1080_v37 = vld [vmem:[%s1297_s5 + $0x8] sm:$0xff]   ;;  %v1081_v38 = vld [vmem:[%s1297_s5] sm:$0xff]  }
  0x23   : > { %v357_v9 = vpack.c.bf16 %v355_v6, %v354_v4  ;;  %987 = vmatprep.subr.bf16.mxu1 %v1068_v10  ;;  %v1082_v39 = vld [vmem:[%s1299_s7 + $0x38] sm:$0xff]   ;;  %v1083_v40 = vld [vmem:[%s1299_s7 + $0x30] sm:$0xff]   ;;  %v1084_v41 = vld [vmem:[%s1299_s7 + $0x28] sm:$0xff]  }
  0x24   : > { %979 = vmatprep.mubr.msk.bf16.mxu0 %vm381_vm0, %v356_v5  ;;  %v1085_v42 = vld [vmem:[%s1299_s7 + $0x20] sm:$0xff]   ;;  %v1086_v62 = vld [vmem:[%s1299_s7 + $0x18] sm:$0xff]   ;;  %v1087_v63 = vld [vmem:[%s1299_s7 + $0x10] sm:$0xff]  }
  0x25   : > { %980 = vmatmul.mubr.msk.bf16.vlgmr.msra.gmra.mxu0 %vm381_vm0, %v357_v9  ;;  %v912_v44 = vld [vmem:[%s1296_s4] ss:$0 sm:$0xff]  ;;  %v1088_v0 = vld [vmem:[%s1299_s7 + $0x8] sm:$0xff]  }
  0x26   : > { %988 = vmatpush3.bf16.msra.mxu1 %v1068_v10  ;;  %1004 = vmatpush3.bf16.msra.mxu0 %v1074_v16  ;;  %v1089_v1 = vld [vmem:[%s1299_s7] sm:$0xff]  }
  0x27   : > { %989 = vmatprep.subr.bf16.mxu1 %v1069_v11  ;;  %1005 = vmatprep.subr.bf16.mxu0 %v1075_v17  ;;  %v921_v3 = vld [vmem:[%s1298_s6] ss:$0 sm:$0xff] }
  0x2a   : > { %990 = vmatpush3.bf16.msra.mxu1 %v1069_v11  ;;  %1006 = vmatpush3.bf16.msra.mxu0 %v1075_v17 }
  0x2b   : > { %991 = vmatprep.subr.bf16.mxu1 %v1070_v12  ;;  %1007 = vmatprep.subr.bf16.mxu0 %v1076_v18 }
  0x2e   : > { %992 = vmatpush3.bf16.msra.mxu1 %v1070_v12  ;;  %1008 = vmatpush3.bf16.msra.mxu0 %v1076_v18 }
  0x2f   : > { %993 = vmatprep.subr.bf16.mxu1 %v1071_v13  ;;  %1009 = vmatprep.subr.bf16.mxu0 %v1077_v19 }
  0x32   : > { %994 = vmatpush3.bf16.msra.mxu1 %v1071_v13  ;;  %1010 = vmatpush3.bf16.msra.mxu0 %v1077_v19 }
  0x33   : > { %995 = vmatprep.subr.bf16.mxu1 %v1072_v14  ;;  %1011 = vmatprep.subr.bf16.mxu0 %v1078_v35 }
  0x36   : > { %996 = vmatpush3.bf16.msra.mxu1 %v1072_v14  ;;  %1012 = vmatpush3.bf16.msra.mxu0 %v1078_v35 }
  0x37   : > { %997 = vmatprep.subr.bf16.mxu1 %v1073_v15  ;;  %1013 = vmatprep.subr.bf16.mxu0 %v1079_v36 }
  0x3a   : > { %998 = vmatpush3.bf16.msra.mxu1 %v1073_v15  ;;  %1014 = vmatpush3.bf16.msra.mxu0 %v1079_v36 }
  0x3b   : > { %1015 = vmatprep.subr.bf16.mxu0 %v1080_v37  ;;  %1023 = vmatprep.subr.bf16.mxu1 %v1082_v39 }
  0x3e   : > { %1016 = vmatpush3.bf16.msra.mxu0 %v1080_v37 }
  0x3f   : > { %1017 = vmatprep.subr.bf16.mxu0 %v1081_v38 }
  0x42   : > { %1018 = vmatpush3.bf16.msra.mxu0 %v1081_v38 }
  0xe5   : > { %v981_v20 = vpop.f32.mrf.mxu0 }
  0xe6   : > { %v431_v26 = vadd.f32 %v981_v20, %v907_v22 }
  0xe7   : > { %v422_v21 = vpop.f32.mrf.mxu0 }
  0xe8   : > { %v423_v24 = vadd.f32 %v907_v22, %v422_v21  ;;  %v439_v32 = vmax.f32 %v431_v26, 0.0 }
  0xe9   : > { %v982_v23 = vpop.f32.mrf.mxu0 }
  0xea   : > { %v434_v25 = vadd.f32 %v982_v23, %v907_v22  ;;  %v437_v30 = vmax.f32 %v423_v24, 0.0 }
  0xeb   : > { %v425_v27 = vpop.f32.mrf.mxu0 }
  0xec   : > { %v426_v28 = vadd.f32 %v907_v22, %v425_v27  ;;  %v440_v29 = vmax.f32 %v434_v25, 0.0  ;;  %v930_v22 = vld [vmem:[%s1300_s8] ss:$0 sm:$0xff] }
  0xee   : > { %v438_v31 = vmax.f32 %v426_v28, 0.0  ;;  %v442_v34 = vpack.c.bf16 %v440_v29, %v439_v32 }
  0xf0   : > { %v441_v33 = vpack.c.bf16 %v438_v31, %v437_v30 }
  0xf2   : > { %999 = vmatprep.mubr.bf16.mxu1 %v441_v33 }
  0xf3   : > { %1000 = vmatmul.mubr.bf16.vlgmr.msra.gmra.mxu1 %v442_v34 }
  0xf4   : > { %1024 = vmatpush3.bf16.msra.mxu1 %v1082_v39 }
  0xf5   : > { %1025 = vmatprep.subr.bf16.mxu1 %v1083_v40 }
  0xf8   : > { %1026 = vmatpush3.bf16.msra.mxu1 %v1083_v40 }
  0xf9   : > { %1027 = vmatprep.subr.bf16.mxu1 %v1084_v41 }
  0xfc   : > { %1028 = vmatpush3.bf16.msra.mxu1 %v1084_v41 }
  0xfd   : > { %1029 = vmatprep.subr.bf16.mxu1 %v1085_v42 }
 0x100   : > { %1030 = vmatpush3.bf16.msra.mxu1 %v1085_v42 }
 0x101   : > { %1031 = vmatprep.subr.bf16.mxu1 %v1086_v62 }
 0x104   : > { %1032 = vmatpush3.bf16.msra.mxu1 %v1086_v62 }
 0x105   : > { %1033 = vmatprep.subr.bf16.mxu1 %v1087_v63 }
 0x108   : > { %1034 = vmatpush3.bf16.msra.mxu1 %v1087_v63 }
 0x109   : > { %1035 = vmatprep.subr.bf16.mxu1 %v1088_v0 }
 0x10c   : > { %1036 = vmatpush3.bf16.msra.mxu1 %v1088_v0 }
 0x10d   : > { %1037 = vmatprep.subr.bf16.mxu1 %v1089_v1 }
 0x110   : > { %1038 = vmatpush3.bf16.msra.mxu1 %v1089_v1 }
 0x1b3   : > { %v1001_v43 = vpop.f32.mrf.mxu1 }
 0x1b4   : > { %v557_v47 = vadd.f32 %v1001_v43, %v912_v44 }
 0x1b5   : > { %v548_v45 = vpop.f32.mrf.mxu1 }
 0x1b6   : > { %v549_v46 = vadd.f32 %v912_v44, %v548_v45  ;;  %v565_v54 = vmax.f32 %v557_v47, 0.0 }
 0x1b7   : > { %v1002_v48 = vpop.f32.mrf.mxu1 }
 0x1b8   : > { %v560_v49 = vadd.f32 %v1002_v48, %v912_v44  ;;  %v563_v51 = vmax.f32 %v549_v46, 0.0  ;;  %v569_v59 = vadd.f32 %v565_v54, %v439_v32 }
 0x1b9   : > { %v551_v50 = vpop.f32.mrf.mxu1 }
 0x1ba   : > { %v566_v52 = vmax.f32 %v560_v49, 0.0  ;;  %v552_v53 = vadd.f32 %v912_v44, %v551_v50  ;;  %v567_v57 = vadd.f32 %v563_v51, %v437_v30 }
 0x1bc   : > { %v564_v55 = vmax.f32 %v552_v53, 0.0  ;;  %v570_v56 = vadd.f32 %v566_v52, %v440_v29 }
 0x1be   : > { %v568_v58 = vadd.f32 %v564_v55, %v438_v31  ;;  %v572_v61 = vpack.c.bf16 %v570_v56, %v569_v59 }
 0x1c0   : > { %v571_v60 = vpack.c.bf16 %v568_v58, %v567_v57 }
 0x1c2   : > { %1019 = vmatprep.mubr.bf16.mxu0 %v571_v60 }
 0x1c3   : > { %1020 = vmatmul.mubr.bf16.vlgmr.msra.gmra.mxu0 %v572_v61 }
 0x283   : > { %v1021_v2 = vpop.f32.mrf.mxu0 }
 0x284   : > { %v687_v6 = vadd.f32 %v1021_v2, %v921_v3 }
 0x285   : > { %v678_v4 = vpop.f32.mrf.mxu0 }
 0x286   : > { %v679_v5 = vadd.f32 %v921_v3, %v678_v4  ;;  %v695_v13 = vmax.f32 %v687_v6, 0.0 }
 0x287   : > { %v1022_v7 = vpop.f32.mrf.mxu0 }
 0x288   : > { %v690_v8 = vadd.f32 %v1022_v7, %v921_v3  ;;  %v693_v10 = vmax.f32 %v679_v5, 0.0  ;;  %v699_v18 = vadd.f32 %v695_v13, %v569_v59 }
 0x289   : > { %v681_v9 = vpop.f32.mrf.mxu0 }
 0x28a   : > { %v696_v11 = vmax.f32 %v690_v8, 0.0  ;;  %v682_v12 = vadd.f32 %v921_v3, %v681_v9  ;;  %v697_v16 = vadd.f32 %v693_v10, %v567_v57 }
 0x28c   : > { %v694_v14 = vmax.f32 %v682_v12, 0.0  ;;  %v700_v15 = vadd.f32 %v696_v11, %v570_v56 }
 0x28e   : > { %v698_v17 = vadd.f32 %v694_v14, %v568_v58  ;;  %v702_v20 = vpack.c.bf16 %v700_v15, %v699_v18 }
 0x290   : > { %v701_v19 = vpack.c.bf16 %v698_v17, %v697_v16 }
 0x292   : > { %1039 = vmatprep.mubr.bf16.mxu1 %v701_v19 }
 0x293   : > { %1040 = vmatmul.mubr.bf16.vlgmr.msra.gmra.mxu1 %v702_v20 }
 0x353   : > { %v1041_v21 = vpop.f32.mrf.mxu1 }
 0x354   : > { %v817_v28 = vadd.f32 %v1041_v21, %v930_v22 }
 0x355   : > { %v808_v23 = vpop.f32.mrf.mxu1 }
 0x356   : > { %v809_v24 = vadd.f32 %v930_v22, %v808_v23  ;;  %826 = vst.msk [vmem:[%s349_s13 + $0x10] sm:$0xff] %vm823_vm1, %v817_v28 }
 0x357   : > { %v1042_v25 = vpop.f32.mrf.mxu1 }
 0x358   : > { %824 = vst.msk [vmem:[%s349_s13] sm:$0xff] %vm823_vm1, %v809_v24  ;;  %v820_v29 = vadd.f32 %v1042_v25, %v930_v22 }
 0x359   : > { %v811_v26 = vpop.f32.mrf.mxu1 }
 0x35a   : > { %v812_v27 = vadd.f32 %v930_v22, %v811_v26  ;;  %827 = vst.msk [vmem:[%s349_s13 + $0x18] sm:$0xff] %vm823_vm1, %v820_v29 }
 0x35c   : > { %825 = vst.msk [vmem:[%s349_s13 + $0x8] sm:$0xff] %vm823_vm1, %v812_v27 }
 0x35d PF: > { %s20_s30 = sadd.s32 1, %s1126_s30  }
 0x35e   : > { %p17_p1 = scmp.ge.s32.totalorder %s20_s30, 4  }
 0x360   :  { %19 = sbr.rel (!%p17_p1) target bundleno = 1 (0x1), region = 91 }
 0x365   :  { %850 = vsyncpa [#allocation3], 1 }
 0x366   :  { %852 = vsyncpa [#allocation3 + $0x1], 1 }

</bundles_post_ra>
